<compile_context>
chip_gen: v5e
topology: v5e:2x2
jax: 0.10.0
libtpu: 0.0.40
codegen_flags: <defaults>
</compile_context>

<pallas_src>
import math

import jax
import jax.numpy as jnp
from jax.experimental import pallas as pl
from jax.experimental.pallas import tpu as pltpu

# ----------------------------- config (LMConfig) -----------------------------
DIM = 32
MULTIPLE_OF = 64
_hd = int(2 * (4 * DIM) / 3)
HIDDEN = MULTIPLE_OF * ((_hd + MULTIPLE_OF - 1) // MULTIPLE_OF)   # -> 128
N_ROUTED = 4            # n_routed_experts
TOP_K = 2               # num_experts_per_tok
NORM_TOPK_PROB = True
N_SHARED = 1            # n_shared_experts (not None -> one shared FeedForward)
E_TOTAL = N_ROUTED + (1 if N_SHARED is not None else 0)
BSZ, SEQ = 2, 8


# ------------------------------- Pallas kernel -------------------------------
def moe_expert_kernel(x_ref, route_ref, w13_ref, w2_ref, o_ref):
    """Single invocation (no grid) — everything is resident in VMEM.

    x_ref:     [T, D]            bf16  tokens (pre-cast in the wrapper)
    route_ref: [T, E_TOTAL]      f32   dense routing weights (shared col == 1.0)
    w13_ref:   [D, E_TOTAL*2H]   bf16  per-expert [W1_e || W3_e] blocks, expert-major
    w2_ref:    [E_TOTAL*H, D]    bf16  W2_e stacked along rows, expert-major
    o_ref:     [T, D]            f32
    """
    # One lane-dense MXU matmul covering W1/W3 of ALL experts at once.
    h_all = jnp.dot(x_ref[...], w13_ref[...],
                    preferred_element_type=jnp.float32)          # [T, E*2H] f32
    route = route_ref[...]                                       # [T, E] f32

    g_parts = []
    for e in range(E_TOTAL):                # static, fully unrolled (E_TOTAL == 5)
        base = 2 * HIDDEN * e
        h1 = h_all[:, base:base + HIDDEN]                 # static 128-aligned lane slices
        h3 = h_all[:, base + HIDDEN:base + 2 * HIDDEN]
        g = h1 * jax.nn.sigmoid(h1) * h3                  # SwiGLU in f32
        w_e = route[:, e:e + 1]                           # [T, 1] static lane slice
        # Hard-zero unrouted tokens so a non-finite expert value can never
        # poison the combine (the W2 matmul of exact zeros stays zero).
        g_parts.append(jnp.where(w_e > 0.0, w_e * g, 0.0).astype(jnp.bfloat16))

    g_cat = jnp.concatenate(g_parts, axis=1)              # [T, E*H] bf16
    # Second MXU matmul fused over experts (K = E_TOTAL*H), f32 accumulation.
    o_ref[...] = jnp.dot(g_cat, w2_ref[...], preferred_element_type=jnp.float32)


# --------------------------------- wrapper -----------------------------------
@jax.jit
def moe_feedforward(x, wg, w13_fused, w2_stacked):
    """x: [B, S, D] f32.  wg: [n_routed, D] f32.
    w13_fused:  [D, E_TOTAL*2H] bf16 (per-expert [W1_e || W3_e] blocks).
    w2_stacked: [E_TOTAL*H, D]  bf16 (W2_e stacked row-wise, expert-major).
    Returns [B, S, D] f32 (eval-mode forward of MOEFeedForward)."""
    bsz, seq, dim = x.shape
    T = bsz * seq
    xf = x.reshape(T, dim).astype(jnp.float32)

    # ---- MoE gate in plain JAX (tiny [T,4] matmul + softmax + top-k) ----
    logits = jnp.dot(xf, wg.T)
    scores = jax.nn.softmax(logits, axis=-1)
    topk_w, topk_idx = jax.lax.top_k(scores, TOP_K)
    if TOP_K > 1 and NORM_TOPK_PROB:
        topk_w = topk_w / (jnp.sum(topk_w, axis=-1, keepdims=True) + 1e-20)

    # Dense routing matrix [T, n_routed]: top-k weight where selected, else 0.
    route = jnp.zeros((T, N_ROUTED), jnp.float32).at[
        jnp.arange(T)[:, None], topk_idx].set(topk_w)
    if N_SHARED is not None:
        # Shared expert participates for every token with weight 1.0
        # (equivalent to `y + shared_experts(identity)`).
        route = jnp.concatenate([route, jnp.ones((T, 1), jnp.float32)], axis=1)

    xb = xf.astype(jnp.bfloat16)   # pre-cast: halves activation DMA bytes

    # TODO(synk): at production MoE sizes switch to grouped/gathered routing
    # (scalar-prefetch per-expert token offsets driving the x index_map +
    # pl.when to skip empty experts) so compute scales with TOP_K not E_TOTAL;
    # reintroduce a token/K grid with per-generation weight tiling (v7x: 64 MiB
    # VMEM + explicit vmem_limit_bytes; v6e/v5e: optional pl.Buffered(3) weight
    # prefetch) and prefer expert- over token-sharding across v7x's two TCs to
    # avoid doubling weight DMA.  Note o last dim is 32 (<128 lanes) -> masked
    # stores; irrelevant at 2 KB writeback, resolves itself once D >= 128.
    vm = pltpu.MemorySpace.VMEM
    y = pl.pallas_call(
        moe_expert_kernel,
        out_shape=jax.ShapeDtypeStruct((T, dim), jnp.float32),
        in_specs=[
            pl.BlockSpec(memory_space=vm),   # x (bf16)
            pl.BlockSpec(memory_space=vm),   # route
            pl.BlockSpec(memory_space=vm),   # W1||W3 fused, all experts
            pl.BlockSpec(memory_space=vm),   # W2 stacked, all experts
        ],
        out_specs=pl.BlockSpec(memory_space=vm),
    )(xb, route, w13_fused, w2_stacked)

    return y.reshape(bsz, seq, dim)


# ------------------------------ references -----------------------------------
def _route_matrix(xf, wg):
    logits = xf @ wg.T
    scores = jax.nn.softmax(logits, axis=-1)
    topk_w, topk_idx = jax.lax.top_k(scores, TOP_K)
    if TOP_K > 1 and NORM_TOPK_PROB:
        topk_w = topk_w / (jnp.sum(topk_w, axis=-1, keepdims=True) + 1e-20)
    T = xf.shape[0]
    route = jnp.zeros((T, N_ROUTED), jnp.float32).at[
        jnp.arange(T)[:, None], topk_idx].set(topk_w)
    if N_SHARED is not None:
        route = jnp.concatenate([route, jnp.ones((T, 1), jnp.float32)], axis=1)
    return route


def reference_matched(x, wg, w13_fused, w2_stacked):
    """Same math/precision as the kernel (bf16 matmul inputs, f32 accumulate)."""
    bsz, seq, dim = x.shape
    xf = x.reshape(-1, dim).astype(jnp.float32)
    route = _route_matrix(xf, wg)
    xb = xf.astype(jnp.bfloat16)
    h_all = jnp.dot(xb, w13_fused, preferred_element_type=jnp.float32)
    g_parts = []
    for e in range(E_TOTAL):
        base = 2 * HIDDEN * e
        h1 = h_all[:, base:base + HIDDEN]
        h3 = h_all[:, base + HIDDEN:base + 2 * HIDDEN]
        g = h1 * jax.nn.sigmoid(h1) * h3
        w_e = route[:, e:e + 1]
        g_parts.append(jnp.where(w_e > 0.0, w_e * g, 0.0).astype(jnp.bfloat16))
    g_cat = jnp.concatenate(g_parts, axis=1)
    y = jnp.dot(g_cat, w2_stacked, preferred_element_type=jnp.float32)
    return y.reshape(bsz, seq, dim)


def reference_f32(x, wg, w1_all, w3_all, w2_all):
    """Original module semantics (eval mode) in full f32."""
    bsz, seq, dim = x.shape
    xf = x.reshape(-1, dim).astype(jnp.float32)
    route = _route_matrix(xf, wg)
    y = jnp.zeros_like(xf)
    for e in range(route.shape[1]):
        h1 = xf @ w1_all[e]
        h3 = xf @ w3_all[e]
        out = (jax.nn.silu(h1) * h3) @ w2_all[e]
        y = y + route[:, e:e + 1] * out
    return y.reshape(bsz, seq, dim)


# ------------------------------------ main ------------------------------------
if __name__ == "__main__":
    key = jax.random.PRNGKey(0)
    keys = jax.random.split(key, 5)

    # nn.Linear / kaiming_uniform(a=sqrt(5)) default: U(-1/sqrt(fan_in), +)
    b_gate = 1.0 / math.sqrt(DIM)
    wg = jax.random.uniform(keys[0], (N_ROUTED, DIM), jnp.float32, -b_gate, b_gate)

    b1 = 1.0 / math.sqrt(DIM)      # w1, w3: fan_in = DIM
    b2 = 1.0 / math.sqrt(HIDDEN)   # w2:     fan_in = HIDDEN
    # stored pre-transposed for x @ W:  W1,W3: [E, D, H]   W2: [E, H, D]
    # routed experts first, the shared expert last (index N_ROUTED).
    w1_all = jax.random.uniform(keys[1], (E_TOTAL, DIM, HIDDEN), jnp.float32, -b1, b1)
    w3_all = jax.random.uniform(keys[2], (E_TOTAL, DIM, HIDDEN), jnp.float32, -b1, b1)
    w2_all = jax.random.uniform(keys[3], (E_TOTAL, HIDDEN, DIM), jnp.float32, -b2, b2)

    # Host-side fusion + bf16 cast (MoE inference is weight-bandwidth bound).
    #   w13_fused[d, e*2H + c] = W1_e[d, c]        for c <  H
    #                          = W3_e[d, c - H]    for c >= H
    w13_fused = jnp.transpose(
        jnp.concatenate([w1_all, w3_all], axis=-1), (1, 0, 2)
    ).reshape(DIM, E_TOTAL * 2 * HIDDEN).astype(jnp.bfloat16)
    #   w2_stacked[e*H + h, :] = W2_e[h, :]
    w2_stacked = w2_all.reshape(E_TOTAL * HIDDEN, DIM).astype(jnp.bfloat16)

    x = jax.random.normal(keys[4], (BSZ, SEQ, DIM), jnp.float32)

    y = moe_feedforward(x, wg, w13_fused, w2_stacked)
    y = jax.block_until_ready(y)
    assert y.shape == (BSZ, SEQ, DIM)
    assert bool(jnp.all(jnp.isfinite(y)))

    # Matches the kernel's precision (bf16 matmul inputs, f32 accumulation).
    y_ref = reference_matched(x, wg, w13_fused, w2_stacked)
    err = jnp.max(jnp.abs(y - y_ref))
    assert jnp.allclose(y, y_ref, atol=1e-2, rtol=1e-2), f"max abs err {err}"

    # Original full-f32 module semantics (loose tol covers the bf16 weight cast).
    y_f32 = reference_f32(x, wg, w1_all, w3_all, w2_all)
    err32 = jnp.max(jnp.abs(y - y_f32))
    assert jnp.allclose(y, y_f32, atol=1e-1, rtol=1e-1), f"max abs err {err32}"

    print("KERNEL_OK")
</pallas_src>

<mosaic_0001>
module attributes {stable_mosaic.version = 11 : i64} {
  func.func @moe_expert_kernel(%arg0: memref<16x32xbf16, #tpu.memory_space<vmem>>, %arg1: memref<16x5xf32, #tpu.memory_space<vmem>>, %arg2: memref<32x1280xbf16, #tpu.memory_space<vmem>>, %arg3: memref<640x32xbf16, #tpu.memory_space<vmem>>, %arg4: memref<16x32xf32, #tpu.memory_space<vmem>>) attributes {dimension_semantics = [], scalar_prefetch = 0 : i64, scratch_operands = 0 : i64, tpu.core_type = #tpu.core_type<tc>} {
    %c0 = arith.constant 0 : index
    %c0_0 = arith.constant 0 : index
    %0 = vector.load %arg0[%c0, %c0_0] : memref<16x32xbf16, #tpu.memory_space<vmem>>, vector<16x32xbf16>
    %c0_1 = arith.constant 0 : index
    %c0_2 = arith.constant 0 : index
    %1 = vector.load %arg2[%c0_1, %c0_2] : memref<32x1280xbf16, #tpu.memory_space<vmem>>, vector<32x1280xbf16>
    %cst = arith.constant dense<0.000000e+00> : vector<16x1280xf32>
    %2 = tpu.matmul %0, %1, %cst {dimension_numbers = #tpu.dot_dimension_numbers<[1], [0], [0], [1], [0, 0, 1, 1], [], []>} : vector<16x32xbf16>, vector<32x1280xbf16>, vector<16x1280xf32> -> vector<16x1280xf32>
    %c0_3 = arith.constant 0 : index
    %c0_4 = arith.constant 0 : index
    %3 = vector.load %arg1[%c0_3, %c0_4] : memref<16x5xf32, #tpu.memory_space<vmem>>, vector<16x5xf32>
    %4 = vector.extract_strided_slice %2 {offsets = [0, 0], sizes = [16, 128], strides = [1, 1]} : vector<16x1280xf32> to vector<16x128xf32>
    %5 = vector.extract_strided_slice %2 {offsets = [0, 128], sizes = [16, 128], strides = [1, 1]} : vector<16x1280xf32> to vector<16x128xf32>
    %6 = arith.negf %4 : vector<16x128xf32>
    %7 = math.exp %6 : vector<16x128xf32>
    %cst_5 = arith.constant 1.000000e+00 : f32
    %8 = vector.broadcast %cst_5 : f32 to vector<16x128xf32>
    %9 = arith.addf %8, %7 : vector<16x128xf32>
    %10 = arith.divf %8, %9 : vector<16x128xf32>
    %11 = arith.mulf %4, %10 : vector<16x128xf32>
    %12 = arith.mulf %11, %5 : vector<16x128xf32>
    %13 = vector.extract_strided_slice %3 {offsets = [0, 0], sizes = [16, 1], strides = [1, 1]} : vector<16x5xf32> to vector<16x1xf32>
    %cst_6 = arith.constant 0.000000e+00 : f32
    %14 = vector.broadcast %cst_6 : f32 to vector<16x1xf32>
    %15 = arith.cmpf ogt, %13, %14 : vector<16x1xf32>
    %16 = vector.broadcast %13 : vector<16x1xf32> to vector<16x128xf32>
    %17 = arith.mulf %16, %12 : vector<16x128xf32>
    %cst_7 = arith.constant 0.000000e+00 : f32
    %18 = vector.shape_cast %15 : vector<16x1xi1> to vector<16x1xi1>
    %19 = vector.broadcast %18 : vector<16x1xi1> to vector<16x128xi1>
    %20 = vector.broadcast %cst_7 : f32 to vector<16x128xf32>
    %21 = arith.select %19, %17, %20 : vector<16x128xi1>, vector<16x128xf32>
    %22 = arith.truncf %21 : vector<16x128xf32> to vector<16x128xbf16>
    %23 = vector.extract_strided_slice %2 {offsets = [0, 256], sizes = [16, 128], strides = [1, 1]} : vector<16x1280xf32> to vector<16x128xf32>
    %24 = vector.extract_strided_slice %2 {offsets = [0, 384], sizes = [16, 128], strides = [1, 1]} : vector<16x1280xf32> to vector<16x128xf32>
    %25 = arith.negf %23 : vector<16x128xf32>
    %26 = math.exp %25 : vector<16x128xf32>
    %cst_8 = arith.constant 1.000000e+00 : f32
    %27 = vector.broadcast %cst_8 : f32 to vector<16x128xf32>
    %28 = arith.addf %27, %26 : vector<16x128xf32>
    %29 = arith.divf %27, %28 : vector<16x128xf32>
    %30 = arith.mulf %23, %29 : vector<16x128xf32>
    %31 = arith.mulf %30, %24 : vector<16x128xf32>
    %32 = vector.extract_strided_slice %3 {offsets = [0, 1], sizes = [16, 1], strides = [1, 1]} : vector<16x5xf32> to vector<16x1xf32>
    %cst_9 = arith.constant 0.000000e+00 : f32
    %33 = vector.broadcast %cst_9 : f32 to vector<16x1xf32>
    %34 = arith.cmpf ogt, %32, %33 : vector<16x1xf32>
    %35 = vector.broadcast %32 : vector<16x1xf32> to vector<16x128xf32>
    %36 = arith.mulf %35, %31 : vector<16x128xf32>
    %cst_10 = arith.constant 0.000000e+00 : f32
    %37 = vector.shape_cast %34 : vector<16x1xi1> to vector<16x1xi1>
    %38 = vector.broadcast %37 : vector<16x1xi1> to vector<16x128xi1>
    %39 = vector.broadcast %cst_10 : f32 to vector<16x128xf32>
    %40 = arith.select %38, %36, %39 : vector<16x128xi1>, vector<16x128xf32>
    %41 = arith.truncf %40 : vector<16x128xf32> to vector<16x128xbf16>
    %42 = vector.extract_strided_slice %2 {offsets = [0, 512], sizes = [16, 128], strides = [1, 1]} : vector<16x1280xf32> to vector<16x128xf32>
    %43 = vector.extract_strided_slice %2 {offsets = [0, 640], sizes = [16, 128], strides = [1, 1]} : vector<16x1280xf32> to vector<16x128xf32>
    %44 = arith.negf %42 : vector<16x128xf32>
    %45 = math.exp %44 : vector<16x128xf32>
    %cst_11 = arith.constant 1.000000e+00 : f32
    %46 = vector.broadcast %cst_11 : f32 to vector<16x128xf32>
    %47 = arith.addf %46, %45 : vector<16x128xf32>
    %48 = arith.divf %46, %47 : vector<16x128xf32>
    %49 = arith.mulf %42, %48 : vector<16x128xf32>
    %50 = arith.mulf %49, %43 : vector<16x128xf32>
    %51 = vector.extract_strided_slice %3 {offsets = [0, 2], sizes = [16, 1], strides = [1, 1]} : vector<16x5xf32> to vector<16x1xf32>
    %cst_12 = arith.constant 0.000000e+00 : f32
    %52 = vector.broadcast %cst_12 : f32 to vector<16x1xf32>
    %53 = arith.cmpf ogt, %51, %52 : vector<16x1xf32>
    %54 = vector.broadcast %51 : vector<16x1xf32> to vector<16x128xf32>
    %55 = arith.mulf %54, %50 : vector<16x128xf32>
    %cst_13 = arith.constant 0.000000e+00 : f32
    %56 = vector.shape_cast %53 : vector<16x1xi1> to vector<16x1xi1>
    %57 = vector.broadcast %56 : vector<16x1xi1> to vector<16x128xi1>
    %58 = vector.broadcast %cst_13 : f32 to vector<16x128xf32>
    %59 = arith.select %57, %55, %58 : vector<16x128xi1>, vector<16x128xf32>
    %60 = arith.truncf %59 : vector<16x128xf32> to vector<16x128xbf16>
    %61 = vector.extract_strided_slice %2 {offsets = [0, 768], sizes = [16, 128], strides = [1, 1]} : vector<16x1280xf32> to vector<16x128xf32>
    %62 = vector.extract_strided_slice %2 {offsets = [0, 896], sizes = [16, 128], strides = [1, 1]} : vector<16x1280xf32> to vector<16x128xf32>
    %63 = arith.negf %61 : vector<16x128xf32>
    %64 = math.exp %63 : vector<16x128xf32>
    %cst_14 = arith.constant 1.000000e+00 : f32
    %65 = vector.broadcast %cst_14 : f32 to vector<16x128xf32>
    %66 = arith.addf %65, %64 : vector<16x128xf32>
    %67 = arith.divf %65, %66 : vector<16x128xf32>
    %68 = arith.mulf %61, %67 : vector<16x128xf32>
    %69 = arith.mulf %68, %62 : vector<16x128xf32>
    %70 = vector.extract_strided_slice %3 {offsets = [0, 3], sizes = [16, 1], strides = [1, 1]} : vector<16x5xf32> to vector<16x1xf32>
    %cst_15 = arith.constant 0.000000e+00 : f32
    %71 = vector.broadcast %cst_15 : f32 to vector<16x1xf32>
    %72 = arith.cmpf ogt, %70, %71 : vector<16x1xf32>
    %73 = vector.broadcast %70 : vector<16x1xf32> to vector<16x128xf32>
    %74 = arith.mulf %73, %69 : vector<16x128xf32>
    %cst_16 = arith.constant 0.000000e+00 : f32
    %75 = vector.shape_cast %72 : vector<16x1xi1> to vector<16x1xi1>
    %76 = vector.broadcast %75 : vector<16x1xi1> to vector<16x128xi1>
    %77 = vector.broadcast %cst_16 : f32 to vector<16x128xf32>
    %78 = arith.select %76, %74, %77 : vector<16x128xi1>, vector<16x128xf32>
    %79 = arith.truncf %78 : vector<16x128xf32> to vector<16x128xbf16>
    %80 = vector.extract_strided_slice %2 {offsets = [0, 1024], sizes = [16, 128], strides = [1, 1]} : vector<16x1280xf32> to vector<16x128xf32>
    %81 = vector.extract_strided_slice %2 {offsets = [0, 1152], sizes = [16, 128], strides = [1, 1]} : vector<16x1280xf32> to vector<16x128xf32>
    %82 = arith.negf %80 : vector<16x128xf32>
    %83 = math.exp %82 : vector<16x128xf32>
    %cst_17 = arith.constant 1.000000e+00 : f32
    %84 = vector.broadcast %cst_17 : f32 to vector<16x128xf32>
    %85 = arith.addf %84, %83 : vector<16x128xf32>
    %86 = arith.divf %84, %85 : vector<16x128xf32>
    %87 = arith.mulf %80, %86 : vector<16x128xf32>
    %88 = arith.mulf %87, %81 : vector<16x128xf32>
    %89 = vector.extract_strided_slice %3 {offsets = [0, 4], sizes = [16, 1], strides = [1, 1]} : vector<16x5xf32> to vector<16x1xf32>
    %cst_18 = arith.constant 0.000000e+00 : f32
    %90 = vector.broadcast %cst_18 : f32 to vector<16x1xf32>
    %91 = arith.cmpf ogt, %89, %90 : vector<16x1xf32>
    %92 = vector.broadcast %89 : vector<16x1xf32> to vector<16x128xf32>
    %93 = arith.mulf %92, %88 : vector<16x128xf32>
    %cst_19 = arith.constant 0.000000e+00 : f32
    %94 = vector.shape_cast %91 : vector<16x1xi1> to vector<16x1xi1>
    %95 = vector.broadcast %94 : vector<16x1xi1> to vector<16x128xi1>
    %96 = vector.broadcast %cst_19 : f32 to vector<16x128xf32>
    %97 = arith.select %95, %93, %96 : vector<16x128xi1>, vector<16x128xf32>
    %98 = arith.truncf %97 : vector<16x128xf32> to vector<16x128xbf16>
    %99 = tpu.concatenate %22, %41, %60, %79, %98 in 1 : vector<16x128xbf16>, vector<16x128xbf16>, vector<16x128xbf16>, vector<16x128xbf16>, vector<16x128xbf16> -> vector<16x640xbf16>
    %c0_20 = arith.constant 0 : index
    %c0_21 = arith.constant 0 : index
    %100 = vector.load %arg3[%c0_20, %c0_21] : memref<640x32xbf16, #tpu.memory_space<vmem>>, vector<640x32xbf16>
    %cst_22 = arith.constant dense<0.000000e+00> : vector<16x32xf32>
    %101 = tpu.matmul %99, %100, %cst_22 {dimension_numbers = #tpu.dot_dimension_numbers<[1], [0], [0], [1], [0, 0, 1, 1], [], []>} : vector<16x640xbf16>, vector<640x32xbf16>, vector<16x32xf32> -> vector<16x32xf32>
    %c0_23 = arith.constant 0 : index
    %c0_24 = arith.constant 0 : index
    %102 = vector.load %arg4[%c0_23, %c0_24] : memref<16x32xf32, #tpu.memory_space<vmem>>, vector<16x32xf32>
    tpu.vector_store %arg4[%c0_23, %c0_24], %101 {strides = array<i32>} : memref<16x32xf32, #tpu.memory_space<vmem>>, vector<16x32xf32>,
    return
  }
}

</mosaic_0001>

<bundles_post_ra>
// kernel: moe_feedforward.1
= control target key start
LH: loop header
LB: loop body
LE: loop exit
PB: predicated region body
PF: predicated region fallthrough
CT: control target
= control target key end

     0   :  { %v1471_v21 = vmov 0   ;;  %vm146_vm1 = vcmask 261120   ;;  %v1472_v40 = vmov 1   ;;  %s2125_s0 = inlined_call_operand.vmem [shape: bf16[16,32], index: 0, kind: input, shape index: {}]   ;;  %s2126_s1 = inlined_call_operand.vmem [shape: f32[16,5], index: 1, kind: input, shape index: {}]   ;;  %s2127_s2 = inlined_call_operand.vmem [shape: bf16[32,1280], index: 2, kind: input, shape index: {}]   ;;  %s2128_s3 = inlined_call_operand.vmem [shape: bf16[640,32], index: 3, kind: input, shape index: {}]   ;;  %s2129_s4 = inlined_call_operand.hbm [shape: f32[16,32], index: 4, kind: output, shape index: {}]  }
   0x1   :  { %v1104_v0 = vld [vmem:[%s2127_s2 + $0x50] sm:$0xf]  ;;  %v1338_v1 = vld [vmem:[%s2127_s2 + $0x74] sm:$0xf0]  ;;  %v1339_v4 = vld [vmem:[%s2127_s2 + $0x7c] sm:$0xf0]  ;;  %1392 = vset.pattern.permute.xlu1 %v1471_v21  ;;  %1391 = vset.pattern.permute.xlu0 %v1471_v21 }
   0x2   :  { %v1112_v2 = vld [vmem:[%s2127_s2 + $0x58] sm:$0xf]  ;;  %v1105_v3 = vor.u32 %v1338_v1, %v1104_v0  ;;  %v1128_v5 = vld [vmem:[%s2127_s2 + $0x68] sm:$0xf]  ;;  %v1341_v6 = vld [vmem:[%s2127_s2 + $0x8c] sm:$0xf0]  ;;  %1393 = vset.pattern.permute.xlu2 %v1472_v40 }
   0x3   :  { %v1113_v7 = vor.u32 %v1339_v4, %v1112_v2  ;;  %v1129_v8 = vor.u32 %v1341_v6, %v1128_v5  ;;  %v1064_v9 = vld [vmem:[%s2127_s2] sm:$0xf]  ;;  %v1328_v10 = vld [vmem:[%s2127_s2 + $0x24] sm:$0xf0]  ;;  %v1329_v13 = vld [vmem:[%s2127_s2 + $0x2c] sm:$0xf0] }
   0x4   :  { %v1072_v11 = vld [vmem:[%s2127_s2 + $0x8] sm:$0xf]  ;;  %156 = vmatpush.bf16.msra.mxu0 %v1105_v3  ;;  %v1065_v12 = vor.u32 %v1328_v10, %v1064_v9  ;;  %v1088_v14 = vld [vmem:[%s2127_s2 + $0x18] sm:$0xf]  ;;  %v1331_v15 = vld [vmem:[%s2127_s2 + $0x3c] sm:$0xf0] }
   0x5   :  { %184 = vmatpush.bf16.msra.mxu3 %v1113_v7  ;;  %240 = vmatpush.bf16.msra.mxu2 %v1129_v8  ;;  %v1073_v16 = vor.u32 %v1329_v13, %v1072_v11  ;;  %v1089_v17 = vor.u32 %v1331_v15, %v1088_v14  ;;  %v1543_v18 = vld [vmem:[%s2126_s1] sm:$0xff]  ;;  %v1340_v22 = vld [vmem:[%s2127_s2 + $0x84] sm:$0xf0]  ;;  %v1080_v24 = vld [vmem:[%s2127_s2 + $0x10] sm:$0xf] }
   0x6   :  { %v1548_v19 = vld [vmem:[%s2125_s0] sm:$0xff]  ;;  %vm334_vm0 = vcmp.gt.f32.partialorder %v1543_v18, 0.0  ;;  %v1560_v23 = vld [vmem:[%s2126_s1 + $0x8] sm:$0xff]  ;;  %v1330_v27 = vld [vmem:[%s2127_s2 + $0x34] sm:$0xf0]  ;;  %338 = vperm.xlu0 %1391, %v1543_v18   ;;  %405 = vperm.xlu2 %1393, %v1543_v18  }
   0x7   :  { %v1120_v20 = vld [vmem:[%s2127_s2 + $0x60] sm:$0xf]  ;;  %v1565_v25 = vsel %vm334_vm0, 1, %v1471_v21  ;;  %v1334_v28 = vld [vmem:[%s2127_s2 + $0x5c] sm:$0xf]  ;;  %vm335_vm2 = vcmp.gt.f32.partialorder %v1560_v23, 0.0  ;;  %v1081_v35 = vor.u32 %v1330_v27, %v1080_v24 }
   0x8   :  { %v1121_v26 = vor.u32 %v1340_v22, %v1120_v20  ;;  %157 = vmatpush.bf16.msra.mxu0 %v1065_v12  ;;  %351 = vperm.xlu1 %1392, %v1565_v25   ;;  %v1114_v29 = vld [vmem:[%s2127_s2 + $0x80] sm:$0xf0]  ;;  %v1324_v30 = vld [vmem:[%s2127_s2 + $0xc] sm:$0xf]  ;;  %v1074_v32 = vld [vmem:[%s2127_s2 + $0x30] sm:$0xf0] }
   0x9   :  { %185 = vmatpush.bf16.msra.mxu3 %v1073_v16  ;;  %241 = vmatpush.bf16.msra.mxu2 %v1089_v17  ;;  %v1117_v31 = vor.u32 %v1334_v28, %v1114_v29  ;;  %v1333_v33 = vld [vmem:[%s2127_s2 + $0x54] sm:$0xf]  ;;  %v1106_v34 = vld [vmem:[%s2127_s2 + $0x78] sm:$0xf0]  ;;  %v1136_v37 = vld [vmem:[%s2127_s2 + $0x70] sm:$0xf]  ;;  %v1077_v41 = vor.u32 %v1324_v30, %v1074_v32 }
   0xa   :  { %v1109_v36 = vor.u32 %v1333_v33, %v1106_v34  ;;  %v1342_v38 = vld [vmem:[%s2127_s2 + $0x94] sm:$0xf0]  ;;  %v1323_v39 = vld [vmem:[%s2127_s2 + $0x4] sm:$0xf]  ;;  %v1066_v43 = vld [vmem:[%s2127_s2 + $0x28] sm:$0xf0] }
   0xb   :  { %1142 = vmatmul.msk.bf16.vlgmr.msra.gmra.mxu0 %vm146_vm1, %v1548_v19  ;;  %v1137_v42 = vor.u32 %v1342_v38, %v1136_v37  ;;  %v1096_v44 = vld [vmem:[%s2127_s2 + $0x20] sm:$0xf]  ;;  %v1332_v45 = vld [vmem:[%s2127_s2 + $0x44] sm:$0xf0]  ;;  %v1336_v46 = vld [vmem:[%s2127_s2 + $0x6c] sm:$0xf]  ;;  %v1069_v49 = vor.u32 %v1323_v39, %v1066_v43 }
   0xc   :  { %212 = vmatpush.bf16.msrb.mxu0 %v1121_v26  ;;  %1144 = vmatmul.msk.bf16.vlgmr.msra.gmra.mxu3 %vm146_vm1, %v1548_v19  ;;  %v1130_v47 = vld [vmem:[%s2127_s2 + $0x90] sm:$0xf0]  ;;  %v1623_v48 = vsel %vm335_vm2, 1, %v1471_v21  ;;  %v1335_v51 = vld [vmem:[%s2127_s2 + $0x64] sm:$0xf]  ;;  %v1097_v55 = vor.u32 %v1332_v45, %v1096_v44 }
   0xd   :  { %198 = vmatpush.bf16.msrb.mxu3 %v1117_v31  ;;  %1148 = vmatmul.msk.bf16.vlgmr.msra.gmra.mxu2 %vm146_vm1, %v1548_v19  ;;  %v1133_v50 = vor.u32 %v1336_v46, %v1130_v47  ;;  %v1326_v52 = vld [vmem:[%s2127_s2 + $0x1c] sm:$0xf]  ;;  %v1090_v53 = vld [vmem:[%s2127_s2 + $0x40] sm:$0xf0]  ;;  %v1122_v54 = vld [vmem:[%s2127_s2 + $0x88] sm:$0xf0] }
   0xe   :  { %170 = vmatpush.bf16.msra.mxu1 %v1109_v36  ;;  %v1125_v56 = vor.u32 %v1335_v51, %v1122_v54  ;;  %v1325_v57 = vld [vmem:[%s2127_s2 + $0x14] sm:$0xf]  ;;  %v1082_v58 = vld [vmem:[%s2127_s2 + $0x38] sm:$0xf0] }
  0x10   :  { %213 = vmatpush.bf16.msrb.mxu0 %v1081_v35 }
  0x11   :  { %199 = vmatpush.bf16.msrb.mxu3 %v1077_v41 }
  0x14   :  { %268 = vmatpush.bf16.msra.mxu0 %v1137_v42 }
  0x15   :  { %9 = vsyncpa [#allocation3], 0  ;;  %354 = vperm.xlu1 %1392, %v1623_v48   ;;  %343 = vperm.xlu0 %1391, %v1560_v23   ;;  %v1093_v59 = vor.u32 %v1326_v52, %v1090_v53  ;;  %v1085_v60 = vor.u32 %v1325_v57, %v1082_v58  ;;  %v1337_v61 = vld [vmem:[%s2127_s2 + $0x74] sm:$0xf]  ;;  %v1138_v62 = vld [vmem:[%s2127_s2 + $0x98] sm:$0xf0] }
  0x16   :  { %171 = vmatpush.bf16.msra.mxu1 %v1069_v49  ;;  %254 = vmatpush.bf16.msra.mxu3 %v1133_v50  ;;  %v1141_v63 = vor.u32 %v1337_v61, %v1138_v62  ;;  %v1327_v0 = vld [vmem:[%s2127_s2 + $0x24] sm:$0xf]  ;;  %v1098_v1 = vld [vmem:[%s2127_s2 + $0x48] sm:$0xf0]  ;;  %v1473_v3 = vmov 4   ;;  %v1474_v4 = vmov 2  }
  0x17   :  { %409 = vperm.xlu2 %1393, %v1560_v23   ;;  %v1101_v2 = vor.u32 %v1327_v0, %v1098_v1  ;;  %v1475_v5 = vmov 3   ;;  %v1350_v9 = vld [vmem:[%s2128_s3 + $0x38] sm:$0xff]  ;;  %v1349_v12 = vld [vmem:[%s2128_s3 + $0x30] sm:$0xff]  ;;  %v1348_v16 = vld [vmem:[%s2128_s3 + $0x28] sm:$0xff]  ;;  %s1046_s15 = sshll.u32 %s2129_s4, 4  ;;  %s1477_s16 = smov 128   ;;  %s1047_s15 = int_to_ptr.hbm [resolvable:$true] %s1046_s15 }
  0x18   :  { %269 = vmatpush.bf16.msra.mxu0 %v1097_v55  ;;  %968 = vmatpush.bf16.msrb.mxu2 %v1350_v9  ;;  %v1358_v14 = vld [vmem:[%s2128_s3 + $0x78] sm:$0xff]  ;;  %v1347_v24 = vld [vmem:[%s2128_s3 + $0x20] sm:$0xff]  ;;  %v1356_v32 = vld [vmem:[%s2128_s3 + $0x68] sm:$0xff]  ;;  %s1478_s17 = smov 8  }
  0x19   :  { %1143 = vmatmul.msk.bf16.vlgmr.msra.gmra.mxu1 %vm146_vm1, %v1548_v19  ;;  %v1374_v17 = vld [vmem:[%s2128_s3 + $0xf8] sm:$0xff]  ;;  %v1372_v43 = vld [vmem:[%s2128_s3 + $0xe8] sm:$0xff]  ;;  %v1345_v54 = vld [vmem:[%s2128_s3 + $0x10] sm:$0xff] }
  0x1a   :  { %226 = vmatpush.bf16.msrb.mxu1 %v1125_v56  ;;  %255 = vmatpush.bf16.msra.mxu3 %v1093_v59  ;;  %v1346_v38 = vld [vmem:[%s2128_s3 + $0x18] sm:$0xff]  ;;  %v1365_v55 = vld [vmem:[%s2128_s3 + $0xb0] sm:$0xff]  ;;  %v1371_v58 = vld [vmem:[%s2128_s3 + $0xe0] sm:$0xff] }
  0x1b   :  { %1146 = vmatmul.msk.bf16.vlgmr.msrb.gmra.mxu0 %vm146_vm1, %v1548_v19  ;;  %v1366_v39 = vld [vmem:[%s2128_s3 + $0xb8] sm:$0xff]  ;;  %v1344_v9 = vld [vmem:[%s2128_s3 + $0x8] sm:$0xff] }
  0x1c   :  { %1145 = vmatmul.msk.bf16.vlgmr.msrb.gmra.mxu3 %vm146_vm1, %v1548_v19  ;;  %969 = vmatpush.bf16.msrb.mxu2 %v1349_v12  ;;  %v1354_v62 = vld [vmem:[%s2128_s3 + $0x58] sm:$0xff]  ;;  %v1364_v12 = vld [vmem:[%s2128_s3 + $0xa8] sm:$0xff] }
  0x1d   :  { %1395 = vset.pattern.permute.xlu1 %v1472_v40  ;;  %1394 = vset.pattern.permute.xlu0 %v1472_v40 }
  0x1e   :  { %227 = vmatpush.bf16.msrb.mxu1 %v1085_v60  ;;  %418 = vperm.xlu1 %1395, %v1623_v48  }
  0x1f   :  { %415 = vperm.xlu0 %1394, %v1565_v25   ;;  %1396 = vset.pattern.permute.xlu2 %v1473_v3 }
  0x20   :  { %597 = vperm.xlu2 %1396, %v1543_v18   ;;  %982 = vmatpush.bf16.msrb.mxu3 %v1358_v14 }
  0x21   :  { %970 = vmatpush.bf16.msrb.mxu2 %v1348_v16  ;;  %996 = vmatpush.bf16.msrb.mxu0 %v1366_v39 }
  0x22   :  { %282 = vmatpush.bf16.msra.mxu1 %v1141_v63 }
  0x25   :  { %971 = vmatpush.bf16.msrb.mxu2 %v1347_v24  ;;  %997 = vmatpush.bf16.msrb.mxu0 %v1365_v55  ;;  %v1361_v24 = vld [vmem:[%s2128_s3 + $0x90] sm:$0xff] }
  0x26   :  { %283 = vmatpush.bf16.msra.mxu1 %v1101_v2  ;;  %1397 = vset.pattern.permute.xlu1 %v1473_v3 }
  0x27   :  { %1398 = vset.pattern.permute.xlu0 %v1473_v3  ;;  %601 = vperm.xlu1 %1397, %v1560_v23  }
  0x28   :  { %610 = vperm.xlu0 %1398, %v1623_v48   ;;  %607 = vperm.xlu2 %1396, %v1565_v25  }
  0x29   :  { %1147 = vmatmul.msk.bf16.vlgmr.msrb.gmra.mxu1 %vm146_vm1, %v1548_v19  ;;  %972 = vmatpush.bf16.msrb.mxu2 %v1346_v38 }
  0x2a   :  { %1010 = vmatpush.bf16.msrb.mxu1 %v1374_v17  ;;  %998 = vmatpush.bf16.msrb.mxu0 %v1364_v12 }
  0x2b   :  { %1150 = vmatmul.msk.bf16.vlgmr.msra.gmra.mxu0 %vm146_vm1, %v1548_v19 }
  0x2c   :  { %1149 = vmatmul.msk.bf16.vlgmr.msra.gmra.mxu3 %vm146_vm1, %v1548_v19 }
  0x2d   :  { %973 = vmatpush.bf16.msrb.mxu2 %v1345_v54  ;;  %v1369_v54 = vld [vmem:[%s2128_s3 + $0xd0] sm:$0xff] }
  0x2f   :  { %1399 = vset.pattern.permute.xlu1 %v1474_v4 }
  0x30   :  { %1401 = vset.pattern.permute.xlu0 %v1475_v5  ;;  %469 = vperm.xlu1 %1399, %v1543_v18  }
  0x31   :  { %533 = vperm.xlu0 %1401, %v1543_v18   ;;  %1400 = vset.pattern.permute.xlu2 %v1474_v4  ;;  %v1357_v18 = vld [vmem:[%s2128_s3 + $0x70] sm:$0xff] }
  0x32   :  { %473 = vperm.xlu2 %1400, %v1560_v23   ;;  %983 = vmatpush.bf16.msrb.mxu3 %v1357_v18 }
  0x33   :  { %974 = vmatpush.bf16.msrb.mxu2 %v1344_v9 }
  0x36   :  { %984 = vmatpush.bf16.msrb.mxu3 %v1356_v32 }
  0x38   :  { %479 = vperm.xlu1 %1399, %v1565_v25  }
  0x39   :  { %1151 = vmatmul.msk.bf16.vlgmr.msra.gmra.mxu1 %vm146_vm1, %v1548_v19  ;;  %1404 = vset.pattern.permute.xlu0 %v1473_v3 }
  0x3a   :  { %482 = vperm.xlu2 %1400, %v1623_v48  }
  0x40   :  { %1402 = vset.pattern.permute.xlu1 %v1475_v5 }
  0x41   :  { %537 = vperm.xlu1 %1402, %v1560_v23  }
  0x42   :  { %1403 = vset.pattern.permute.xlu2 %v1475_v5 }
  0x43   :  { %543 = vperm.xlu2 %1403, %v1565_v25   ;;  %v1373_v25 = vld [vmem:[%s2128_s3 + $0xf0] sm:$0xff] }
  0x44   :  { %1011 = vmatpush.bf16.msrb.mxu1 %v1373_v25 }
  0x48   :  { %1012 = vmatpush.bf16.msrb.mxu1 %v1372_v43 }
  0x49   :  { %546 = vperm.xlu1 %1402, %v1623_v48   ;;  %v1355_v48 = vld [vmem:[%s2128_s3 + $0x60] sm:$0xff] }
  0x4a   :  { %985 = vmatpush.bf16.msrb.mxu3 %v1355_v48 }
  0x4c   :  { %1013 = vmatpush.bf16.msrb.mxu1 %v1371_v58 }
  0x4e   :  { %986 = vmatpush.bf16.msrb.mxu3 %v1354_v62 }
  0x60   :  { %v1689_v7 = vpop.permute.xlu2 %405 }
  0x71   :  { %v1696_v10 = vpop.permute.xlu2 %409 }
  0x78   :  { %v1737_v30 = vpop.permute.xlu0 %338 }
  0x7a   :  { %v1687_v6 = vpop.permute.xlu1 %351  ;;  %v1733_v28 = vpop.permute.xlu2 %597 }
  0x7b   :  { %vm356_vm2 = vcmp.eq.s32.totalorder %v1687_v6, 1 }
  0x82   :  { %v1776_v51 = vpop.permute.xlu2 %607 }
  0x87   :  { %v1691_v8 = vpop.permute.xlu1 %354  ;;  %v1779_v52 = vpop.permute.xlu0 %343 }
  0x88   :  { %v1698_v11 = vpop.f32.mrf.mxu0 }
  0x89   :  { %v1152_v13 = vmul.f32 -1.442695, %v1698_v11 }
  0x8b   :  { %1405 = vpow2.f32 %v1152_v13  ;;  %v1370_v13 = vld [vmem:[%s2128_s3 + $0xd8] sm:$0xff] }
  0x8c   :  { %1014 = vmatpush.bf16.msrb.mxu1 %v1370_v13  ;;  %v1362_v13 = vld [vmem:[%s2128_s3 + $0x98] sm:$0xff] }
  0x8f   :  { %v1718_v19 = vpop.f32.mrf.mxu3 }
  0x90   :  { %v1707_v15 = vpop.permute.xlu1 %418  ;;  %v1720_v20 = vpop.f32.mrf.mxu2  ;;  %v1154_v21 = vmul.f32 -1.442695, %v1718_v19  ;;  %1015 = vmatpush.bf16.msrb.mxu1 %v1369_v54 }
  0x91   :  { %v1158_v22 = vmul.f32 -1.442695, %v1720_v20  ;;  %v1724_v23 = vpop.f32.mrf.mxu0  ;;  %v1406_v26 = vpop.eup %1405 }
  0x92   :  { %v1153_v27 = vmul.f32 -1.442695, %v1724_v23  ;;  %v1735_v29 = vadd.f32 1.0, %v1406_v26  ;;  %1407 = vpow2.f32 %v1154_v21  ;;  %v1893_v62 = vpop.permute.xlu0 %415 }
  0x93   :  { %1409 = vpow2.f32 %v1158_v22 }
  0x94   :  { %1411 = vrcp.f32 %v1735_v29  ;;  %v309_v41 = vand.u32 2147483647, %v1735_v29  ;;  %v311_v45 = vand.u32 2147483648, %v1735_v29  ;;  %vm305_vm5 = vweird.f32 %v1735_v29 }
  0x95   :  { %1413 = vpow2.f32 %v1153_v27 }
  0x96   :  { %vm1793_vm3 = vcmp.eq.f32.partialorder %v309_v41, 8.507059e+37  ;;  %v312_v60 = vor.u32 1.1754944e-38, %v311_v45  ;;  %v1363_v45 = vld [vmem:[%s2128_s3 + $0xa0] sm:$0xff] }
  0x97   :  { %v1745_v33 = vpop.f32.mrf.mxu3  ;;  %999 = vmatpush.bf16.msrb.mxu0 %v1363_v45 }
  0x98   :  { %v1747_v34 = vpop.f32.mrf.mxu2  ;;  %v1408_v35 = vpop.eup %1407  ;;  %v1155_v36 = vmul.f32 -1.442695, %v1745_v33 }
  0x99   :  { %v1740_v31 = vpop.permute.xlu1 %601  ;;  %v1750_v37 = vpop.f32.mrf.mxu0  ;;  %v1759_v42 = vadd.f32 1.0, %v1408_v35  ;;  %v1159_v47 = vmul.f32 -1.442695, %v1747_v34 }
  0x9a   :  { %v1410_v40 = vpop.eup %1409  ;;  %1415 = vpow2.f32 %v1155_v36  ;;  %v1156_v53 = vmul.f32 -1.442695, %v1750_v37 }
  0x9b   :  { %v1764_v44 = vpop.eup %1411  ;;  %v1767_v46 = vadd.f32 1.0, %v1410_v40  ;;  %1417 = vrcp.f32 %v1759_v42  ;;  %v379_v61 = vand.u32 2147483647, %v1759_v42  ;;  %v381_v0 = vand.u32 2147483648, %v1759_v42  ;;  %1000 = vmatpush.bf16.msrb.mxu0 %v1362_v13 }
  0x9c   :  { %v1414_v49 = vpop.eup %1413  ;;  %v301_v50 = vmul.f32 %v1764_v44, %v1735_v29  ;;  %vm306_vm4 = vweird.f32 %v1764_v44  ;;  %vm375_vm6 = vweird.f32 %v1759_v42  ;;  %v1353_v29 = vld [vmem:[%s2128_s3 + $0x50] sm:$0xff] }
  0x9d   :  { %1419 = vrcp.f32 %v1767_v46  ;;  %v1788_v57 = vadd.f32 1.0, %v1414_v49  ;;  %v507_v3 = vand.u32 2147483647, %v1767_v46  ;;  %v509_v4 = vand.u32 2147483648, %v1767_v46  ;;  %vm1834_vm8 = vmor %vm305_vm5, %vm306_vm4  ;;  %987 = vmatpush.bf16.msrb.mxu3 %v1353_v29  ;;  %v1382_v29 = vld [vmem:[%s2128_s3 + $0x138] sm:$0xff] }
  0x9e   :  { %v302_v56 = vsub.f32 1.0, %v301_v50  ;;  %1421 = vpow2.f32 %v1159_v47  ;;  %vm503_vm7 = vweird.f32 %v1767_v46  ;;  %vm1840_vm9 = vcmp.eq.f32.partialorder %v379_v61, 8.507059e+37  ;;  %v173_v61 = vpop.f32.mrf.mxu1 }
  0x9f   :  { %1423 = vrcp.f32 %v1788_v57  ;;  %v1805_v1 = vpop.f32.mrf.mxu3  ;;  %v324_v25 = vand.u32 2147483647, %v1788_v57  ;;  %v326_v26 = vand.u32 2147483648, %v1788_v57  ;;  %v382_v35 = vor.u32 1.1754944e-38, %v381_v0  ;;  %1001 = vmatpush.bf16.msrb.mxu0 %v1361_v24 }
  0xa0   :  { %v303_v63 = vmul.f32 %v1764_v44, %v302_v56  ;;  %v1416_v2 = vpop.eup %1415  ;;  %1425 = vpow2.f32 %v1156_v53  ;;  %vm1860_vm11 = vcmp.eq.f32.partialorder %v507_v3, 8.507059e+37  ;;  %v1864_v43 = vor.u32 1.1754944e-38, %v509_v4  ;;  %v1878_v53 = vpop.permute.xlu2 %473 }
  0xa1   :  { %v1821_v14 = vpop.eup %1417  ;;  %v1826_v17 = vadd.f32 1.0, %v1416_v2  ;;  %v1846_v27 = vpop.f32.mrf.mxu0  ;;  %vm320_vm12 = vweird.f32 %v1788_v57  ;;  %vm1887_vm14 = vcmp.eq.f32.partialorder %v324_v25, 8.507059e+37  ;;  %vm420_vm5 = vcmp.eq.s32.totalorder %v1893_v62, 1 }
  0xa2   :  { %v1810_v5 = vpop.permute.xlu1 %469  ;;  %v304_v16 = vadd.f32 %v1764_v44, %v303_v63  ;;  %v371_v22 = vmul.f32 %v1821_v14, %v1759_v42  ;;  %vm376_vm10 = vweird.f32 %v1821_v14  ;;  %v1157_v50 = vmul.f32 -1.442695, %v1846_v27  ;;  %v1352_v63 = vld [vmem:[%s2128_s3 + $0x48] sm:$0xff] }
  0xa3   :  { %v1828_v18 = vpop.eup %1419  ;;  %1427 = vrcp.f32 %v1826_v17  ;;  %vm1903_vm15 = vmor %vm375_vm6, %vm376_vm10  ;;  %vm390_vm0 = vweird.f32 %v1826_v17  ;;  %v394_v42 = vand.u32 2147483647, %v1826_v17  ;;  %v396_v12 = vand.u32 2147483648, %v1826_v17  ;;  %988 = vmatpush.bf16.msrb.mxu3 %v1352_v63 }
  0xa4   :  { %v308_v32 = vsel %vm1834_vm8, %v1764_v44, %v304_v16  ;;  %v499_v36 = vmul.f32 %v1828_v18, %v1767_v46  ;;  %v1422_v38 = vpop.eup %1421  ;;  %v372_v40 = vsub.f32 1.0, %v371_v22  ;;  %v1343_v44 = vld [vmem:[%s2128_s3] sm:$0xff]  ;;  %vm504_vm13 = vweird.f32 %v1828_v18  ;;  %v1368_v16 = vld [vmem:[%s2128_s3 + $0xc8] sm:$0xff] }
  0xa5   :  { %v313_v39 = vsel %vm1793_vm3, %v312_v60, %v308_v32  ;;  %v1872_v47 = vpop.eup %1423  ;;  %v1875_v49 = vadd.f32 1.0, %v1422_v38  ;;  %v1891_v60 = vor.u32 1.1754944e-38, %v326_v26  ;;  %975 = vmatpush.bf16.msrb.mxu2 %v1343_v44  ;;  %vm1929_vm3 = vmor %vm503_vm7, %vm504_vm13  ;;  %1016 = vmatpush.bf16.msrb.mxu1 %v1368_v16  ;;  %vm1976_vm8 = vcmp.eq.f32.partialorder %v394_v42, 8.507059e+37  ;;  %v1360_v16 = vld [vmem:[%s2128_s3 + $0x88] sm:$0xff] }
  0xa6   :  { %v500_v48 = vsub.f32 1.0, %v499_v36  ;;  %v1426_v55 = vpop.eup %1425  ;;  %v373_v56 = vmul.f32 %v1821_v14, %v372_v40  ;;  %v316_v58 = vmul.f32 %v1872_v47, %v1788_v57  ;;  %v330_v0 = vmul.f32 %v313_v39, %v1698_v11  ;;  %v1351_v40 = vld [vmem:[%s2128_s3 + $0x40] sm:$0xff]  ;;  %1002 = vmatpush.bf16.msrb.mxu0 %v1360_v16 }
  0xa7   :  { %1429 = vrcp.f32 %v1875_v49  ;;  %v1910_v4 = vpop.f32.mrf.mxu3  ;;  %vm321_vm4 = vweird.f32 %v1872_v47  ;;  %v1934_v26 = vadd.f32 1.0, %v1426_v55  ;;  %v522_v38 = vand.u32 2147483647, %v1875_v49  ;;  %989 = vmatpush.bf16.msrb.mxu3 %v1351_v40 }
  0xa8   :  { %v501_v3 = vmul.f32 %v1828_v18, %v500_v48  ;;  %v374_v11 = vadd.f32 %v1821_v14, %v373_v56  ;;  %v317_v9 = vsub.f32 1.0, %v316_v58  ;;  %1431 = vpow2.f32 %v1157_v50  ;;  %vm322_vm7 = vmor %vm320_vm12, %vm321_vm4  ;;  %v2007_v13 = vpop.permute.xlu2 %482 }
  0xa9   :  { %v1922_v21 = vpop.eup %1427  ;;  %v332_v45 = vmul.f32 %v330_v0, %v173_v61  ;;  %1024 = vmatpush.bf16.msra.mxu2 %v1382_v29  ;;  %v397_v58 = vor.u32 1.1754944e-38, %v396_v12  ;;  %1433 = vrcp.f32 %v1934_v26  ;;  %vm1986_vm10 = vcmp.eq.f32.partialorder %v522_v38, 8.507059e+37  ;;  %v1990_v57 = vpop.f32.mrf.mxu0 }
  0xaa   :  { %v502_v22 = vadd.f32 %v1828_v18, %v501_v3  ;;  %v378_v32 = vsel %vm1903_vm15, %v1821_v14, %v374_v11  ;;  %v318_v36 = vmul.f32 %v1872_v47, %v317_v9  ;;  %v386_v46 = vmul.f32 %v1922_v21, %v1826_v17  ;;  %v1947_v39 = vpop.permute.xlu1 %479  ;;  %v2012_v17 = vpop.permute.xlu0 %610  ;;  %v1378_v9 = vld [vmem:[%s2128_s3 + $0x118] sm:$0xff] }
  0xab   :  { %v383_v44 = vsel %vm1840_vm9, %v382_v35, %v378_v32  ;;  %vm391_vm6 = vweird.f32 %v1922_v21  ;;  %v524_v14 = vand.u32 2147483648, %v1875_v49  ;;  %v1367_v35 = vld [vmem:[%s2128_s3 + $0xc0] sm:$0xff]  ;;  %vm518_vm9 = vweird.f32 %v1875_v49 }
  0xac   :  { %v400_v48 = vmul.f32 %v383_v44, %v1718_v19  ;;  %v506_v50 = vsel %vm1929_vm3, %v1828_v18, %v502_v22  ;;  %v319_v54 = vadd.f32 %v1872_v47, %v318_v36  ;;  %v387_v55 = vsub.f32 1.0, %v386_v46  ;;  %v1381_v19 = vld [vmem:[%s2128_s3 + $0x130] sm:$0xff]  ;;  %vm2002_vm12 = vmor %vm390_vm0, %vm391_vm6  ;;  %1017 = vmatpush.bf16.msrb.mxu1 %v1367_v35 }
  0xad   :  { %v1970_v56 = vpop.eup %1429  ;;  %v511_v11 = vsel %vm1860_vm11, %v1864_v43, %v506_v50  ;;  %v525_v42 = vor.u32 1.1754944e-38, %v524_v14  ;;  %v346_v12 = vmul.f32 %v1737_v30, %v332_v45  ;;  %1025 = vmatpush.bf16.msra.mxu2 %v1381_v19  ;;  %v1380_v30 = vld [vmem:[%s2128_s3 + $0x128] sm:$0xff]  ;;  %vm357_vm13 = vcmp.eq.s32.totalorder %v1691_v8, 1  ;;  %v1379_v50 = vld [vmem:[%s2128_s3 + $0x120] sm:$0xff]  ;;  %v1377_v8 = vld [vmem:[%s2128_s3 + $0x110] sm:$0xff] }
  0xae   :  { %v323_v61 = vsel %vm322_vm7, %v1872_v47, %v319_v54  ;;  %v388_v63 = vmul.f32 %v1922_v21, %v387_v55  ;;  %v514_v0 = vmul.f32 %v1970_v56, %v1875_v49  ;;  %v1432_v3 = vpop.eup %1431  ;;  %vm519_vm11 = vweird.f32 %v1970_v56  ;;  %v1359_v49 = vld [vmem:[%s2128_s3 + $0x80] sm:$0xff] }
  0xaf   :  { %v328_v47 = vsel %vm1887_vm14, %v1891_v60, %v323_v61  ;;  %v402_v59 = vmul.f32 %v400_v48, %v1805_v1  ;;  %v175_v60 = vpop.f32.mrf.mxu1  ;;  %v443_v22 = vand.u32 2147483647, %v1934_v26  ;;  %v445_v25 = vand.u32 2147483648, %v1934_v26  ;;  %v257_v32 = vpop.f32.mrf.mxu3  ;;  %vm2041_vm15 = vmor %vm518_vm9, %vm519_vm11  ;;  %1003 = vmatpush.bf16.msrb.mxu0 %v1359_v49 }
  0xb0   :  { %v389_v41 = vadd.f32 %v1922_v21, %v388_v63  ;;  %v515_v43 = vsub.f32 1.0, %v514_v0  ;;  %v358_v1 = vsel %vm356_vm2, %v346_v12, 0.0  ;;  %v2025_v29 = vadd.f32 1.0, %v1432_v3  ;;  %v1434_v44 = vpop.eup %1433 }
  0xb1   :  { %v331_v36 = vmul.f32 %v328_v47, %v1724_v23  ;;  %vm421_vm14 = vcmp.eq.s32.totalorder %v1707_v15, 1  ;;  %v412_v40 = vmul.f32 %v1689_v7, %v402_v59  ;;  %v528_v6 = vmul.f32 %v511_v11, %v1720_v20  ;;  %1026 = vmatpush.bf16.msra.mxu2 %v1380_v30 }
  0xb2   :  { %v393_v46 = vsel %vm2002_vm12, %v1922_v21, %v389_v41  ;;  %v516_v38 = vmul.f32 %v1970_v56, %v515_v43  ;;  %vm439_vm0 = vweird.f32 %v1934_v26  ;;  %1435 = vrcp.f32 %v2025_v29  ;;  %v544_v41 = vpop.permute.xlu2 %543  ;;  %v534_v16 = vpop.permute.xlu0 %533 }
  0xb3   :  { %v398_v14 = vsel %vm1976_vm8, %v397_v58, %v393_v46  ;;  %v435_v21 = vmul.f32 %v1434_v44, %v1934_v26  ;;  %v360_v45 = vpack.c.bf16 %v358_v1, %v358_v1  ;;  %v2050_v48 = vpop.permute.xlu1 %537  ;;  %vm2058_vm2 = vcmp.eq.f32.partialorder %v443_v22, 8.507059e+37 }
  0xb4   :  { %v401_v7 = vmul.f32 %v398_v14, %v1745_v33  ;;  %v517_v20 = vadd.f32 %v1970_v56, %v516_v38  ;;  %v446_v33 = vor.u32 1.1754944e-38, %v445_v25  ;;  %v422_v55 = vsel %vm420_vm5, %v412_v40, 0.0 }
  0xb5   :  { %v458_v24 = vand.u32 2147483647, %v2025_v29  ;;  %v436_v19 = vsub.f32 1.0, %v435_v21  ;;  %v424_v18 = vpack.c.bf16 %v422_v55, %v422_v55  ;;  %v333_v58 = vmul.f32 %v331_v36, %v175_v60  ;;  %1027 = vmatpush.bf16.msra.mxu2 %v1379_v50  ;;  %v1376_v50 = vld [vmem:[%s2128_s3 + $0x108] sm:$0xff] }
  0xb6   :  { %v521_v35 = vsel %vm2041_vm15, %v1970_v56, %v517_v20  ;;  %vm440_vm3 = vweird.f32 %v1434_v44  ;;  %v403_v63 = vmul.f32 %v401_v7, %v1910_v4  ;;  %v1160_v0 = vmul.f32 -1.442695, %v1990_v57  ;;  %v2074_v56 = vpop.f32.mrf.mxu0 }
  0xb7   :  { %v526_v61 = vsel %vm1986_vm10, %v525_v42, %v521_v35  ;;  %v437_v62 = vmul.f32 %v1434_v44, %v436_v19  ;;  %v620_v3 = vunpack.c.l.b16 %v360_v45  ;;  %v460_v11 = vand.u32 2147483648, %v2025_v29  ;;  %v229_v60 = vpop.f32.mrf.mxu1  ;;  %vm441_vm5 = vmor %vm439_vm0, %vm440_vm3  ;;  %v259_v25 = vpop.f32.mrf.mxu3 }
  0xb8   :  { %v347_v47 = vmul.f32 %v1779_v52, %v333_v58  ;;  %v1436_v2 = vpop.eup %1435  ;;  %v529_v42 = vmul.f32 %v526_v61, %v1747_v34  ;;  %v626_v12 = vunpack.c.l.b16 %v424_v18  ;;  %v413_v4 = vmul.f32 %v1696_v10, %v403_v63  ;;  %v1375_v58 = vld [vmem:[%s2128_s3 + $0x100] sm:$0xff]  ;;  %s1476_s3 = smov [#allocation2]  }
  0xb9   :  { %1437 = vpow2.f32 %v1160_v0  ;;  %v438_v43 = vadd.f32 %v1434_v44, %v437_v62  ;;  %v450_v59 = vmul.f32 %v1436_v2, %v2025_v29  ;;  %vm455_vm4 = vweird.f32 %v1436_v2  ;;  %1028 = vmatpush.bf16.msra.mxu2 %v1378_v9  ;;  %s1044_s12 = sshll.u32 %s1476_s3, 4  ;;  %s1045_s12 = int_to_ptr.vmem [resolvable:$true] %s1044_s12 }
  0xba   :  { %v359_v52 = vsel %vm357_vm13, %v347_v47, 0.0  ;;  %v423_v34 = vsel %vm421_vm14, %v413_v4, 0.0  ;;  %v530_v10 = vmul.f32 %v528_v6, %v257_v32  ;;  %v1161_v22 = vmul.f32 -1.442695, %v2074_v56 }
  0xbb   :  { %v361_v30 = vpack.c.bf16 %v359_v52, %v359_v52  ;;  %v442_v1 = vsel %vm441_vm5, %v1434_v44, %v438_v43  ;;  %v451_v36 = vsub.f32 1.0, %v450_v59  ;;  %v425_v46 = vpack.c.bf16 %v423_v34, %v423_v34  ;;  %v547_v23 = vpop.permute.xlu1 %546 }
  0xbc   :  { %vm548_vm6 = vcmp.eq.s32.totalorder %v544_v41, 1  ;;  %v447_v26 = vsel %vm2058_vm2, %v446_v33, %v442_v1  ;;  %v540_v40 = vmul.f32 %v534_v16, %v530_v10  ;;  %1439 = vpow2.f32 %v1161_v22 }
  0xbd   :  { %v621_v38 = vunpack.c.l.b16 %v361_v30  ;;  %v464_v15 = vmul.f32 %v447_v26, %v1750_v37  ;;  %v452_v32 = vmul.f32 %v1436_v2, %v451_v36  ;;  %v627_v6 = vunpack.c.l.b16 %v425_v46  ;;  %1029 = vmatpush.bf16.msra.mxu2 %v1377_v8 }
  0xbe   :  { %v531_v14 = vmul.f32 %v529_v42, %v259_v25  ;;  %vm454_vm7 = vweird.f32 %v2025_v29  ;;  %v461_v37 = vor.u32 1.1754944e-38, %v460_v11  ;;  %v550_v54 = vsel %vm548_vm6, %v540_v40, 0.0 }
  0xbf   :  { %v1438_v44 = vpop.eup %1437  ;;  %v622_v7 = vpack.c.b16 %v621_v38, %v620_v3  ;;  %v453_v20 = vadd.f32 %v1436_v2, %v452_v32  ;;  %v628_v21 = vpack.c.b16 %v627_v6, %v626_v12  ;;  %v466_v49 = vmul.f32 %v464_v15, %v229_v60  ;;  %vm456_vm8 = vmor %vm454_vm7, %vm455_vm4  ;;  %v231_v0 = vpop.f32.mrf.mxu1 }
  0xc0   :  { %v560_v45 = vadd.f32 1.0, %v1438_v44  ;;  %v541_v33 = vmul.f32 %v2050_v48, %v531_v14  ;;  %vm549_vm9 = vcmp.eq.s32.totalorder %v547_v23, 1  ;;  %vm459_vm10 = vcmp.eq.f32.partialorder %v458_v24, 8.507059e+37 }
  0xc1   :  { %976 = vmatmul.bf16.vlgmr.msrb.gmra.mxu2 %v622_v7  ;;  %v457_v55 = vsel %vm456_vm8, %v1436_v2, %v453_v20  ;;  %990 = vmatmul.bf16.vlgmr.msrb.gmra.mxu3 %v628_v21  ;;  %vm484_vm12 = vcmp.eq.s32.totalorder %v1947_v39, 1  ;;  %v476_v18 = vmul.f32 %v1810_v5, %v466_v49  ;;  %v552_v63 = vpack.c.bf16 %v550_v54, %v550_v54 }
  0xc2   :  { %1441 = vrcp.f32 %v560_v45  ;;  %v1440_v35 = vpop.eup %1439  ;;  %v462_v19 = vsel %vm459_vm10, %v461_v37, %v457_v55  ;;  %1030 = vmatpush.bf16.msra.mxu2 %v1376_v50  ;;  %v551_v29 = vsel %vm549_vm9, %v541_v33, 0.0  ;;  %vm485_vm11 = vcmp.eq.s32.totalorder %v2007_v13, 1 }
  0xc3   :  { %v465_v48 = vmul.f32 %v462_v19, %v1846_v27  ;;  %v561_v61 = vadd.f32 1.0, %v1440_v35  ;;  %v553_v24 = vpack.c.bf16 %v551_v29, %v551_v29  ;;  %v486_v62 = vsel %vm484_vm12, %v476_v18, 0.0 }
  0xc4   :  { %v638_v5 = vunpack.c.l.b16 %v552_v63  ;;  %v488_v2 = vpack.c.bf16 %v486_v62, %v486_v62  ;;  %v571_v41 = vand.u32 2147483647, %v560_v45  ;;  %v573_v43 = vand.u32 2147483648, %v560_v45 }
  0xc5   :  { %1443 = vrcp.f32 %v561_v61  ;;  %v467_v3 = vmul.f32 %v465_v48, %v231_v0  ;;  %v639_v11 = vunpack.c.l.b16 %v553_v24  ;;  %vm567_vm14 = vweird.f32 %v560_v45 }
  0xc6   :  { %1031 = vmatpush.bf16.msra.mxu2 %v1375_v58  ;;  %v632_v16 = vunpack.c.l.b16 %v488_v2  ;;  %vm572_vm0 = vcmp.eq.f32.partialorder %v571_v41, 8.507059e+37  ;;  %v588_v22 = vand.u32 2147483648, %v561_v61  ;;  %v586_v46 = vand.u32 2147483647, %v561_v61 }
  0xc7   :  { %v477_v9 = vmul.f32 %v1878_v53, %v467_v3  ;;  %v640_v27 = vpack.c.b16 %v639_v11, %v638_v5  ;;  %v285_v34 = vpop.f32.mrf.mxu1  ;;  %v574_v53 = vor.u32 1.1754944e-38, %v573_v43  ;;  %vm582_vm3 = vweird.f32 %v561_v61 }
  0xc8   :  { %v1442_v39 = vpop.eup %1441  ;;  %v589_v40 = vor.u32 1.1754944e-38, %v588_v22  ;;  %vm587_vm5 = vcmp.eq.f32.partialorder %v586_v46, 8.507059e+37  ;;  %vm612_vm6 = vcmp.eq.s32.totalorder %v1776_v51, 1  ;;  %vm613_vm7 = vcmp.eq.s32.totalorder %v2012_v17, 1 }
  0xc9   :  { %v563_v47 = vmul.f32 %v1442_v39, %v560_v45  ;;  %v487_v12 = vsel %vm485_vm11, %v477_v9, 0.0  ;;  %1018 = vmatmul.bf16.vlgmr.msrb.gmra.mxu1 %v640_v27  ;;  %vm568_vm13 = vweird.f32 %v1442_v39 }
  0xca   :  { %v489_v59 = vpack.c.bf16 %v487_v12, %v487_v12  ;;  %vm569_vm15 = vmor %vm567_vm14, %vm568_vm13 }
  0xcb   :  { %v564_v42 = vsub.f32 1.0, %v563_v47  ;;  %v1444_v4 = vpop.eup %1443 }
  0xcc   :  { %v578_v60 = vmul.f32 %v1444_v4, %v561_v61  ;;  %v633_v30 = vunpack.c.l.b16 %v489_v59  ;;  %vm583_vm2 = vweird.f32 %v1444_v4 }
  0xcd   :  { %v565_v52 = vmul.f32 %v1442_v39, %v564_v42  ;;  %vm584_vm4 = vmor %vm582_vm3, %vm583_vm2 }
  0xce   :  { %v579_v10 = vsub.f32 1.0, %v578_v60  ;;  %v634_v25 = vpack.c.b16 %v633_v30, %v632_v16 }
  0xcf   :  { %v566_v13 = vadd.f32 %v1442_v39, %v565_v52  ;;  %v287_v44 = vpop.f32.mrf.mxu1 }
  0xd0   :  { %v580_v36 = vmul.f32 %v1444_v4, %v579_v10  ;;  %1004 = vmatmul.bf16.vlgmr.msrb.gmra.mxu0 %v634_v25 }
  0xd1   :  { %v570_v1 = vsel %vm569_vm15, %v1442_v39, %v566_v13 }
  0xd2   :  { %v575_v8 = vsel %vm572_vm0, %v574_v53, %v570_v1  ;;  %v581_v38 = vadd.f32 %v1444_v4, %v580_v36 }
  0xd3   :  { %v592_v26 = vmul.f32 %v575_v8, %v1990_v57 }
  0xd4   :  { %v585_v15 = vsel %vm584_vm4, %v1444_v4, %v581_v38 }
  0xd5   :  { %v594_v32 = vmul.f32 %v592_v26, %v285_v34  ;;  %v590_v6 = vsel %vm587_vm5, %v589_v40, %v585_v15 }
  0xd6   :  { %v593_v14 = vmul.f32 %v590_v6, %v2074_v56 }
  0xd7   :  { %v604_v23 = vmul.f32 %v1733_v28, %v594_v32 }
  0xd8   :  { %v595_v20 = vmul.f32 %v593_v14, %v287_v44 }
  0xd9   :  { %v614_v7 = vsel %vm612_vm6, %v604_v23, 0.0 }
  0xda   :  { %v605_v21 = vmul.f32 %v1740_v31, %v595_v20  ;;  %v616_v57 = vpack.c.bf16 %v614_v7, %v614_v7 }
  0xdc   :  { %v615_v45 = vsel %vm613_vm7, %v605_v21, 0.0  ;;  %v644_v50 = vunpack.c.l.b16 %v616_v57 }
  0xdd   :  { %v617_v49 = vpack.c.bf16 %v615_v45, %v615_v45 }
  0xdf   :  { %v645_v37 = vunpack.c.l.b16 %v617_v49 }
  0xe1   :  { %v646_v54 = vpack.c.b16 %v645_v37, %v644_v50 }
  0xe3   :  { %1032 = vmatmul.bf16.vlgmr.msra.gmra.mxu2 %v646_v54 }
 0x144   :  { %v977_v33 = vpop.f32.mrf.mxu2  ;;  %v991_v56 = vpop.f32.mrf.mxu3 }
 0x145   :  { %v992_v35 = vadd.f32 %v991_v56, %v977_v33 }
 0x146   :  { %v1019_v19 = vpop.f32.mrf.mxu1 }
 0x14c   :  { %v979_v28 = vpop.f32.mrf.mxu2  ;;  %v993_v18 = vpop.f32.mrf.mxu3 }
 0x14d   :  { %v1005_v55 = vpop.f32.mrf.mxu0  ;;  %v994_v61 = vadd.f32 %v993_v18, %v979_v28 }
 0x14e   :  { %v1006_v51 = vadd.f32 %v1005_v55, %v992_v35  ;;  %v1021_v0 = vpop.f32.mrf.mxu1 }
 0x150   :  { %v1020_v58 = vadd.f32 %v1019_v19, %v1006_v51 }
 0x155   :  { %v1007_v48 = vpop.f32.mrf.mxu0 }
 0x156   :  { %v1008_v63 = vadd.f32 %v1007_v48, %v994_v61 }
 0x158   :  { %v1022_v29 = vadd.f32 %v1021_v0, %v1008_v63 }
 0x166   :  { %v1033_v31 = vpop.f32.mrf.mxu2 }
 0x167   :  { %v1034_v17 = vadd.f32 %v1033_v31, %v1020_v58 }
 0x169   :  { %1038 = vst.msk [vmem:[#allocation2] sm:$0xff] %vm146_vm1, %v1034_v17 }
 0x16e   :  { %v1035_v24 = vpop.f32.mrf.mxu2 }
 0x16f   :  { %v1036_v62 = vadd.f32 %v1035_v24, %v1022_v29 }
 0x171   :  { %1039 = vst.msk [vmem:[#allocation2 + $0x8] sm:$0xff] %vm146_vm1, %v1036_v62 }
 0x172   :  { %1052 = dma.vmem_to_hbm [thread:$0]  %s1045_s12, 256, %s1047_s15, [#allocation3], %s1477_s16, %s1477_s16, %s1478_s17  }
 0x173   :  { %1469 = dma.done.wait [#allocation3], 256  }
 0x174   :  { %1470 = vsyncadd [#allocation3], 4294967040 }
 0x175   :  { %1057 = vsyncpa [#allocation3], 1 }

</bundles_post_ra>
